<compile_context>
chip_gen: v6e
topology: v6e:2x2x1
jax: 0.10.0
libtpu: 0.0.40
codegen_flags: <defaults>
</compile_context>

<pallas_src>
import functools

import numpy as np
import jax
import jax.numpy as jnp
from jax import lax
from jax.experimental import pallas as pl
from jax.experimental.pallas import tpu as pltpu

_VMEM_LIMIT = 32 * 1024 * 1024  # stay well under v7x's 64 MiB physical VMEM


def _round_up(x, m):
    return ((x + m - 1) // m) * m


# ----------------------------------------------------------------------------
# Parameter construction (deterministic, mirrors STFT.__init__); cached so it
# is never rebuilt per call / per trace.
# ----------------------------------------------------------------------------
def _hann_periodic(n):
    # scipy.signal.get_window('hann', n, fftbins=True)
    return (0.5 - 0.5 * np.cos(2.0 * np.pi * np.arange(n) / n)).astype(np.float64)


@functools.lru_cache(maxsize=None)
def make_stft_bases(filter_length, hop_length, win_length, window="hann"):
    scale = filter_length / hop_length
    fourier_basis = np.fft.fft(np.eye(filter_length))
    cutoff = int(filter_length / 2 + 1)
    fourier_basis = np.vstack(
        [np.real(fourier_basis[:cutoff, :]), np.imag(fourier_basis[:cutoff, :])]
    )
    forward_basis = fourier_basis.astype(np.float32)                            # (2C, FL)
    inverse_basis = np.linalg.pinv(scale * fourier_basis).T.astype(np.float32)  # (2C, FL)

    if window is not None:
        assert filter_length >= win_length
        fft_window = _hann_periodic(win_length)
        pad_left = int((filter_length - win_length) // 2)
        pad_right = filter_length - win_length - pad_left
        fft_window = np.pad(fft_window, (pad_left, pad_right)).astype(np.float32)
        forward_basis = forward_basis * fft_window[None, :]
        inverse_basis = inverse_basis * fft_window[None, :]
    return forward_basis, inverse_basis


@functools.lru_cache(maxsize=None)
def window_sumsquare(win_length, n_fft, hop_length, n_frames):
    # librosa.filters.window_sumsquare with norm=None
    n = n_fft + hop_length * (n_frames - 1)
    x = np.zeros(n, dtype=np.float32)
    win_sq = _hann_periodic(win_length) ** 2
    pad_left = (n_fft - win_length) // 2
    win_sq = np.pad(win_sq, (pad_left, n_fft - win_length - pad_left)).astype(np.float32)
    for i in range(n_frames):
        s = i * hop_length
        x[s:min(n, s + n_fft)] += win_sq[: max(0, min(n_fft, n - s))]
    return x


@functools.lru_cache(maxsize=None)
def _prepare_operands(filter_length, hop_length, win_length, window):
    """Padded, kernel-ready bases (cached per STFT config)."""
    fl, hop = filter_length, hop_length
    cutoff = int(fl / 2 + 1)
    c2 = 2 * cutoff
    c2p = _round_up(c2, 128)          # lane-dense spectrogram columns
    flp = _round_up(fl, 128)          # lane-dense contraction dim
    r = -(-fl // hop)                 # ceil(FL / hop): frames overlapping a sample

    fwd, inv = make_stft_bases(fl, hop, win_length, window)

    # forward basis, transposed and zero-padded to (FLp, C2p)
    fwd_t = np.zeros((flp, c2p), np.float32)
    fwd_t[:fl, :c2] = fwd.T

    # inverse basis, rows padded to C2p, time dim padded to R*hop and chunked
    # into R hop-wide slices: (R, C2p, hop)
    inv_p = np.zeros((c2p, r * hop), np.float32)
    inv_p[:c2, :fl] = inv
    inv_chunks = np.ascontiguousarray(inv_p.reshape(c2p, r, hop).transpose(1, 0, 2))

    return fwd_t, inv_chunks, cutoff, c2, c2p, flp, r


@functools.lru_cache(maxsize=None)
def _prepare_norm(filter_length, hop_length, win_length, window, n_frames, tp):
    """window-sum normalization * (FL/hop), reshaped to (Tp, hop) hop-blocks."""
    fl, hop = filter_length, hop_length
    out_len = fl + hop * (n_frames - 1)
    if window is not None:
        wsum = window_sumsquare(win_length, fl, hop, n_frames)
        tiny = np.finfo(np.float32).tiny
        norm = np.where(wsum > tiny, 1.0 / wsum, 1.0).astype(np.float32)
        norm = norm * np.float32(float(fl) / hop)
    else:
        norm = np.ones(out_len, dtype=np.float32)
    full = np.ones(tp * hop, dtype=np.float32)
    full[:out_len] = norm
    return full.reshape(tp, hop)


# ----------------------------------------------------------------------------
# Pallas kernels
# ----------------------------------------------------------------------------
def _stft_fwd_kernel(frames_ref, basis_ref, s_ref):
    # forward conv1d (stride = hop) as one MXU matmul per (batch, frame-tile)
    s_ref[0] = jnp.dot(
        frames_ref[0], basis_ref[...], preferred_element_type=jnp.float32
    )


def pallas_stft_transform(frames, basis_t, tile_t):
    b, tp, flp = frames.shape
    c2p = basis_t.shape[1]
    grid = (b, tp // tile_t)
    return pl.pallas_call(
        _stft_fwd_kernel,
        out_shape=jax.ShapeDtypeStruct((b, tp, c2p), jnp.float32),
        grid_spec=pltpu.PrefetchScalarGridSpec(
            num_scalar_prefetch=0,
            grid=grid,
            in_specs=[
                pl.BlockSpec((1, tile_t, flp), lambda bi, ti: (bi, ti, 0)),
                pl.BlockSpec((flp, c2p), lambda bi, ti: (0, 0)),
            ],
            out_specs=pl.BlockSpec((1, tile_t, c2p), lambda bi, ti: (bi, ti, 0)),
        ),
        compiler_params=pltpu.CompilerParams(
            dimension_semantics=("parallel", "parallel"),
            vmem_limit_bytes=_VMEM_LIMIT,
        ),
    )(frames, basis_t)


def _make_istft_kernel(tile_t, hop, r):
    def kernel(s_ref, invb_ref, norm_ref, out_ref, carry_ref):
        # carry holds overlap-add spill-over from the previous frame tile;
        # zero it at the start of every batch row's sweep.
        @pl.when(pl.program_id(1) == 0)
        def _():
            carry_ref[...] = jnp.zeros_like(carry_ref)

        s_tile = s_ref[0]                       # (tile_t, C2p)
        acc = carry_ref[...]                    # (tile_t, hop), rows >= r-1 are 0
        carry_ref[...] = jnp.zeros_like(carry_ref)
        row = lax.broadcasted_iota(jnp.int32, (tile_t, hop), 0)

        for d in range(r):                      # r = ceil(FL / hop), static & small
            # per-frame contribution of time-chunk d (goes to output row t + d)
            y_d = jnp.dot(
                s_tile, invb_ref[d], preferred_element_type=jnp.float32
            )                                   # (tile_t, hop)
            if d == 0:
                acc = acc + y_d
            else:
                rolled = pltpu.roll(y_d, shift=d, axis=0)
                acc = acc + jnp.where(row >= d, rolled, 0.0)
                # wrapped rows belong to the next output tile -> carry them
                carry_ref[...] = carry_ref[...] + jnp.where(row < d, rolled, 0.0)

        # fused window-sum normalization (+ FL/hop rescale)
        out_ref[0] = acc * norm_ref[...]

    return kernel


def pallas_istft(s, inv_chunks, norm, tile_t, hop):
    b, tp, c2p = s.shape
    r = inv_chunks.shape[0]
    grid = (b, tp // tile_t)
    return pl.pallas_call(
        _make_istft_kernel(tile_t, hop, r),
        out_shape=jax.ShapeDtypeStruct((b, tp, hop), jnp.float32),
        grid_spec=pltpu.PrefetchScalarGridSpec(
            num_scalar_prefetch=0,
            grid=grid,
            in_specs=[
                pl.BlockSpec((1, tile_t, c2p), lambda bi, ti: (bi, ti, 0)),
                pl.BlockSpec((r, c2p, hop), lambda bi, ti: (0, 0, 0)),
                pl.BlockSpec((tile_t, hop), lambda bi, ti: (ti, 0)),
            ],
            out_specs=pl.BlockSpec((1, tile_t, hop), lambda bi, ti: (bi, ti, 0)),
            scratch_shapes=[pltpu.VMEM((tile_t, hop), jnp.float32)],
        ),
        compiler_params=pltpu.CompilerParams(
            # The overlap-add carry makes the frame-tile axis sequential; keep
            # the batch axis sequential too so the single carry buffer is safe.
            dimension_semantics=("arbitrary", "arbitrary"),
            vmem_limit_bytes=_VMEM_LIMIT,
        ),
    )(s, inv_chunks, norm)


# ----------------------------------------------------------------------------
# Forward wrapper (reproduces STFT.forward = transform -> inverse, conv path)
# ----------------------------------------------------------------------------
@functools.partial(jax.jit, static_argnums=(1, 2, 3, 4))
def stft_forward(x, filter_length, hop_length, win_length, window="hann"):
    b, ns = x.shape
    fl, hop = filter_length, hop_length
    pad = int(fl / 2)

    fwd_t, inv_chunks, cutoff, c2, c2p, flp, r = _prepare_operands(
        fl, hop, win_length, window
    )

    # ---- transform ----
    xp = jnp.pad(x, ((0, 0), (pad, pad)), mode="reflect")        # torch reflect pad
    t = (ns + 2 * pad - fl) // hop + 1
    # TODO(synk): host-side framing duplicates samples ~FL/hop x in HBM; an
    # in-kernel strided-DMA framing (pl.ANY audio input) would remove it.
    idx = np.arange(t)[:, None] * hop + np.arange(fl)[None, :]
    frames = xp[:, idx]                                          # (B, T, FL)

    # frame-tile size; Tp >= T + R - 1 so the last carry is provably zero.
    tile_t = min(128, _round_up(t + r - 1, 8))
    tp = _round_up(t + r - 1, tile_t)
    frames = jnp.pad(frames, ((0, 0), (0, tp - t), (0, flp - fl)))

    s = pallas_stft_transform(frames, jnp.asarray(fwd_t), tile_t)  # (B, Tp, C2p)

    real = s[:, :t, :cutoff]
    imag = s[:, :t, cutoff:c2]
    magnitude = jnp.transpose(jnp.sqrt(real * real + imag * imag), (0, 2, 1))
    phase = jnp.transpose(jnp.arctan2(imag, real), (0, 2, 1))

    # ---- inverse ----
    # recombine(magnitude, phase) == [real, imag] == s, so the inverse consumes
    # the spectrogram directly: no sqrt/atan2/cos/sin round trip, no extra HBM
    # pass over the spectrogram.
    out_len = fl + hop * (t - 1)
    norm = _prepare_norm(fl, hop, win_length, window, t, tp)

    y = pallas_istft(s, jnp.asarray(inv_chunks), jnp.asarray(norm), tile_t, hop)
    y = y.reshape(b, tp * hop)
    reconstruction = y[:, pad:out_len - pad]                      # (B, num_samples)
    return reconstruction, magnitude, phase


# ----------------------------------------------------------------------------
# Pure-numpy reference (same math, no Pallas) for a correctness check
# ----------------------------------------------------------------------------
def stft_forward_ref(x_np, filter_length, hop_length, win_length, window="hann"):
    b, ns = x_np.shape
    fl, hop = filter_length, hop_length
    cutoff = int(fl / 2 + 1)
    pad = int(fl / 2)
    fwd, inv = make_stft_bases(fl, hop, win_length, window)

    xp = np.pad(x_np, ((0, 0), (pad, pad)), mode="reflect")
    t = (ns + 2 * pad - fl) // hop + 1
    idx = np.arange(t)[:, None] * hop + np.arange(fl)[None, :]
    frames = xp[:, idx]                                          # (B, T, FL)
    s = frames @ fwd.T                                           # (B, T, 2C)
    real, imag = s[..., :cutoff], s[..., cutoff:]
    mag = np.sqrt(real ** 2 + imag ** 2)
    ph = np.arctan2(imag, real)
    recomb = np.concatenate([mag * np.cos(ph), mag * np.sin(ph)], axis=-1)

    out_len = fl + hop * (t - 1)
    y = np.zeros((b, out_len), np.float32)
    contrib = recomb @ inv                                       # (B, T, FL)
    for ti in range(t):
        y[:, ti * hop:ti * hop + fl] += contrib[:, ti, :]
    if window is not None:
        wsum = window_sumsquare(win_length, fl, hop, t)
        tiny = np.finfo(np.float32).tiny
        norm = np.where(wsum > tiny, 1.0 / wsum, 1.0).astype(np.float32) * (float(fl) / hop)
        y = y * norm[None, :]
    return y[:, pad:out_len - pad], np.transpose(mag, (0, 2, 1)).astype(np.float32)


if __name__ == "__main__":
    # Small, module-consistent shapes: filter_length=16, hop=4, win=16,
    # input_data of shape (batch=2, num_samples=64).
    FILTER_LENGTH, HOP_LENGTH, WIN_LENGTH = 16, 4, 16
    B, NUM_SAMPLES = 2, 64

    key = jax.random.PRNGKey(0)
    x = jax.random.normal(key, (B, NUM_SAMPLES), dtype=jnp.float32)

    recon, magnitude, phase = stft_forward(
        x, FILTER_LENGTH, HOP_LENGTH, WIN_LENGTH, "hann"
    )
    recon = jax.block_until_ready(recon)

    recon_ref, mag_ref = stft_forward_ref(
        np.asarray(x), FILTER_LENGTH, HOP_LENGTH, WIN_LENGTH, "hann"
    )
    assert recon.shape == (B, NUM_SAMPLES)
    np.testing.assert_allclose(np.asarray(recon), recon_ref, rtol=1e-3, atol=1e-3)
    np.testing.assert_allclose(np.asarray(magnitude), mag_ref, rtol=1e-3, atol=1e-3)

    print("KERNEL_OK")
</pallas_src>

<mosaic_0001>
module attributes {stable_mosaic.version = 11 : i64} {
  func.func @_stft_fwd_kernel(%arg0: i32, %arg1: i32, %arg2: memref<1x24x128xf32, #tpu.memory_space<vmem>>, %arg3: memref<128x128xf32, #tpu.memory_space<vmem>>, %arg4: memref<1x24x128xf32, #tpu.memory_space<vmem>>) attributes {dimension_semantics = [#tpu.dimension_semantics<parallel>, #tpu.dimension_semantics<parallel>], iteration_bounds = array<i64: 2, 1>, scalar_prefetch = 0 : i64, scratch_operands = 0 : i64, tpu.core_type = #tpu.core_type<tc>, window_params = [{transform_indices = @transform_0, window_bounds = array<i64: 1, 24, 128>}, {pipeline_mode = #tpu.pipeline_mode<synchronous>, transform_indices = @transform_1, window_bounds = array<i64: 128, 128>}, {transform_indices = @transform_2, window_bounds = array<i64: 1, 24, 128>}]} {
    %c0 = arith.constant 0 : index
    %c0_0 = arith.constant 0 : index
    %c0_1 = arith.constant 0 : index
    %0 = vector.load %arg2[%c0, %c0_0, %c0_1] : memref<1x24x128xf32, #tpu.memory_space<vmem>>, vector<1x24x128xf32>
    %1 = vector.shape_cast %0 : vector<1x24x128xf32> to vector<24x128xf32>
    %c0_2 = arith.constant 0 : index
    %c0_3 = arith.constant 0 : index
    %2 = vector.load %arg3[%c0_2, %c0_3] : memref<128x128xf32, #tpu.memory_space<vmem>>, vector<128x128xf32>
    %cst = arith.constant dense<0.000000e+00> : vector<24x128xf32>
    %3 = tpu.matmul %1, %2, %cst {dimension_numbers = #tpu.dot_dimension_numbers<[1], [0], [0], [1], [0, 0, 1, 1], [], []>} : vector<24x128xf32>, vector<128x128xf32>, vector<24x128xf32> -> vector<24x128xf32>
    %c0_4 = arith.constant 0 : index
    %c0_5 = arith.constant 0 : index
    %c0_6 = arith.constant 0 : index
    %4 = vector.load %arg4[%c0_4, %c0_5, %c0_6] : memref<1x24x128xf32, #tpu.memory_space<vmem>>, vector<1x24x128xf32>
    %5 = vector.shape_cast %4 : vector<1x24x128xf32> to vector<24x128xf32>
    %6 = vector.shape_cast %3 : vector<24x128xf32> to vector<1x24x128xf32>
    tpu.vector_store %arg4[%c0_4, %c0_5, %c0_6], %6 {strides = array<i32>} : memref<1x24x128xf32, #tpu.memory_space<vmem>>, vector<1x24x128xf32>,
    return
  }
  func.func @transform_0(%arg0: i32, %arg1: i32) -> (i32, i32, i32) {
    %c0_i32 = arith.constant 0 : i32
    %c0_i32_0 = arith.constant 0 : i32
    return %arg0, %arg1, %c0_i32 : i32, i32, i32
  }
  func.func @transform_1(%arg0: i32, %arg1: i32) -> (i32, i32) {
    %c0_i32 = arith.constant 0 : i32
    %c0_i32_0 = arith.constant 0 : i32
    %c0_i32_1 = arith.constant 0 : i32
    return %c0_i32, %c0_i32_0 : i32, i32
  }
  func.func @transform_2(%arg0: i32, %arg1: i32) -> (i32, i32, i32) {
    %c0_i32 = arith.constant 0 : i32
    %c0_i32_0 = arith.constant 0 : i32
    return %arg0, %arg1, %c0_i32 : i32, i32, i32
  }
}

module attributes {stable_mosaic.version = 11 : i64} {
  func.func @kernel(%arg0: i32, %arg1: i32, %arg2: memref<1x24x128xf32, #tpu.memory_space<vmem>>, %arg3: memref<4x128x4xf32, #tpu.memory_space<vmem>>, %arg4: memref<24x4xf32, #tpu.memory_space<vmem>>, %arg5: memref<1x24x4xf32, #tpu.memory_space<vmem>>, %arg6: memref<24x4xf32, #tpu.memory_space<vmem>>) attributes {dimension_semantics = [#tpu.dimension_semantics<arbitrary>, #tpu.dimension_semantics<arbitrary>], iteration_bounds = array<i64: 2, 1>, scalar_prefetch = 0 : i64, scratch_operands = 1 : i64, tpu.core_type = #tpu.core_type<tc>, window_params = [{transform_indices = @transform_0, window_bounds = array<i64: 1, 24, 128>}, {pipeline_mode = #tpu.pipeline_mode<synchronous>, transform_indices = @transform_1, window_bounds = array<i64: 4, 128, 4>}, {transform_indices = @transform_2, window_bounds = array<i64: 24, 4>}, {transform_indices = @transform_3, window_bounds = array<i64: 1, 24, 4>}]} {
    %c0_i32 = arith.constant 0 : i32
    %0 = arith.cmpi eq, %arg1, %c0_i32 : i32
    %1 = arith.extui %0 : i1 to i32
    %c0_i32_0 = arith.constant 0 : i32
    %2 = arith.cmpi ne, %1, %c0_i32_0 : i32
    scf.if %2 {
      %cst_49 = arith.constant 0.000000e+00 : f32
      %66 = vector.broadcast %cst_49 : f32 to vector<24x4xf32>
      %c0_50 = arith.constant 0 : index
      %c0_51 = arith.constant 0 : index
      %67 = vector.load %arg6[%c0_50, %c0_51] : memref<24x4xf32, #tpu.memory_space<vmem>>, vector<24x4xf32>
      tpu.vector_store %arg6[%c0_50, %c0_51], %66 {strides = array<i32>} : memref<24x4xf32, #tpu.memory_space<vmem>>, vector<24x4xf32>,
    } else {
    }
    %c0 = arith.constant 0 : index
    %c0_1 = arith.constant 0 : index
    %c0_2 = arith.constant 0 : index
    %3 = vector.load %arg2[%c0, %c0_1, %c0_2] : memref<1x24x128xf32, #tpu.memory_space<vmem>>, vector<1x24x128xf32>
    %4 = vector.shape_cast %3 : vector<1x24x128xf32> to vector<24x128xf32>
    %c0_3 = arith.constant 0 : index
    %c0_4 = arith.constant 0 : index
    %5 = vector.load %arg6[%c0_3, %c0_4] : memref<24x4xf32, #tpu.memory_space<vmem>>, vector<24x4xf32>
    %cst = arith.constant 0.000000e+00 : f32
    %6 = vector.broadcast %cst : f32 to vector<24x4xf32>
    %c0_5 = arith.constant 0 : index
    %c0_6 = arith.constant 0 : index
    %7 = vector.load %arg6[%c0_5, %c0_6] : memref<24x4xf32, #tpu.memory_space<vmem>>, vector<24x4xf32>
    tpu.vector_store %arg6[%c0_5, %c0_6], %6 {strides = array<i32>} : memref<24x4xf32, #tpu.memory_space<vmem>>, vector<24x4xf32>,
    %8 = tpu.iota {dimensions = array<i32: 0>} : vector<24x4xi32>
    %c0_7 = arith.constant 0 : index
    %c0_8 = arith.constant 0 : index
    %c0_9 = arith.constant 0 : index
    %9 = vector.load %arg3[%c0_7, %c0_8, %c0_9] : memref<4x128x4xf32, #tpu.memory_space<vmem>>, vector<1x128x4xf32>
    %10 = vector.shape_cast %9 : vector<1x128x4xf32> to vector<128x4xf32>
    %cst_10 = arith.constant dense<0.000000e+00> : vector<24x4xf32>
    %11 = tpu.matmul %4, %10, %cst_10 {dimension_numbers = #tpu.dot_dimension_numbers<[1], [0], [0], [1], [0, 0, 1, 1], [], []>} : vector<24x128xf32>, vector<128x4xf32>, vector<24x4xf32> -> vector<24x4xf32>
    %12 = arith.addf %5, %11 : vector<24x4xf32>
    %c1 = arith.constant 1 : index
    %c0_11 = arith.constant 0 : index
    %c0_12 = arith.constant 0 : index
    %13 = vector.load %arg3[%c1, %c0_11, %c0_12] : memref<4x128x4xf32, #tpu.memory_space<vmem>>, vector<1x128x4xf32>
    %14 = vector.shape_cast %13 : vector<1x128x4xf32> to vector<128x4xf32>
    %cst_13 = arith.constant dense<0.000000e+00> : vector<24x4xf32>
    %15 = tpu.matmul %4, %14, %cst_13 {dimension_numbers = #tpu.dot_dimension_numbers<[1], [0], [0], [1], [0, 0, 1, 1], [], []>} : vector<24x128xf32>, vector<128x4xf32>, vector<24x4xf32> -> vector<24x4xf32>
    %c1_i32 = arith.constant 1 : i32
    %16 = tpu.dynamic_rotate %15 by %c1_i32 dim 0 : vector<24x4xf32>, i32 -> vector<24x4xf32>
    %c1_i32_14 = arith.constant 1 : i32
    %17 = vector.broadcast %c1_i32_14 : i32 to vector<24x4xi32>
    %18 = arith.cmpi sge, %8, %17 : vector<24x4xi32>
    %cst_15 = arith.constant 0.000000e+00 : f32
    %19 = vector.broadcast %cst_15 : f32 to vector<24x4xf32>
    %20 = arith.select %18, %16, %19 : vector<24x4xi1>, vector<24x4xf32>
    %21 = arith.addf %12, %20 : vector<24x4xf32>
    %c0_16 = arith.constant 0 : index
    %c0_17 = arith.constant 0 : index
    %22 = vector.load %arg6[%c0_16, %c0_17] : memref<24x4xf32, #tpu.memory_space<vmem>>, vector<24x4xf32>
    %c1_i32_18 = arith.constant 1 : i32
    %23 = vector.broadcast %c1_i32_18 : i32 to vector<24x4xi32>
    %24 = arith.cmpi slt, %8, %23 : vector<24x4xi32>
    %cst_19 = arith.constant 0.000000e+00 : f32
    %25 = vector.broadcast %cst_19 : f32 to vector<24x4xf32>
    %26 = arith.select %24, %16, %25 : vector<24x4xi1>, vector<24x4xf32>
    %27 = arith.addf %22, %26 : vector<24x4xf32>
    %c0_20 = arith.constant 0 : index
    %c0_21 = arith.constant 0 : index
    %28 = vector.load %arg6[%c0_20, %c0_21] : memref<24x4xf32, #tpu.memory_space<vmem>>, vector<24x4xf32>
    tpu.vector_store %arg6[%c0_20, %c0_21], %27 {strides = array<i32>} : memref<24x4xf32, #tpu.memory_space<vmem>>, vector<24x4xf32>,
    %c2 = arith.constant 2 : index
    %c0_22 = arith.constant 0 : index
    %c0_23 = arith.constant 0 : index
    %29 = vector.load %arg3[%c2, %c0_22, %c0_23] : memref<4x128x4xf32, #tpu.memory_space<vmem>>, vector<1x128x4xf32>
    %30 = vector.shape_cast %29 : vector<1x128x4xf32> to vector<128x4xf32>
    %cst_24 = arith.constant dense<0.000000e+00> : vector<24x4xf32>
    %31 = tpu.matmul %4, %30, %cst_24 {dimension_numbers = #tpu.dot_dimension_numbers<[1], [0], [0], [1], [0, 0, 1, 1], [], []>} : vector<24x128xf32>, vector<128x4xf32>, vector<24x4xf32> -> vector<24x4xf32>
    %c2_i32 = arith.constant 2 : i32
    %32 = tpu.dynamic_rotate %31 by %c2_i32 dim 0 : vector<24x4xf32>, i32 -> vector<24x4xf32>
    %c2_i32_25 = arith.constant 2 : i32
    %33 = vector.broadcast %c2_i32_25 : i32 to vector<24x4xi32>
    %34 = arith.cmpi sge, %8, %33 : vector<24x4xi32>
    %cst_26 = arith.constant 0.000000e+00 : f32
    %35 = vector.broadcast %cst_26 : f32 to vector<24x4xf32>
    %36 = arith.select %34, %32, %35 : vector<24x4xi1>, vector<24x4xf32>
    %37 = arith.addf %21, %36 : vector<24x4xf32>
    %c0_27 = arith.constant 0 : index
    %c0_28 = arith.constant 0 : index
    %38 = vector.load %arg6[%c0_27, %c0_28] : memref<24x4xf32, #tpu.memory_space<vmem>>, vector<24x4xf32>
    %c2_i32_29 = arith.constant 2 : i32
    %39 = vector.broadcast %c2_i32_29 : i32 to vector<24x4xi32>
    %40 = arith.cmpi slt, %8, %39 : vector<24x4xi32>
    %cst_30 = arith.constant 0.000000e+00 : f32
    %41 = vector.broadcast %cst_30 : f32 to vector<24x4xf32>
    %42 = arith.select %40, %32, %41 : vector<24x4xi1>, vector<24x4xf32>
    %43 = arith.addf %38, %42 : vector<24x4xf32>
    %c0_31 = arith.constant 0 : index
    %c0_32 = arith.constant 0 : index
    %44 = vector.load %arg6[%c0_31, %c0_32] : memref<24x4xf32, #tpu.memory_space<vmem>>, vector<24x4xf32>
    tpu.vector_store %arg6[%c0_31, %c0_32], %43 {strides = array<i32>} : memref<24x4xf32, #tpu.memory_space<vmem>>, vector<24x4xf32>,
    %c3 = arith.constant 3 : index
    %c0_33 = arith.constant 0 : index
    %c0_34 = arith.constant 0 : index
    %45 = vector.load %arg3[%c3, %c0_33, %c0_34] : memref<4x128x4xf32, #tpu.memory_space<vmem>>, vector<1x128x4xf32>
    %46 = vector.shape_cast %45 : vector<1x128x4xf32> to vector<128x4xf32>
    %cst_35 = arith.constant dense<0.000000e+00> : vector<24x4xf32>
    %47 = tpu.matmul %4, %46, %cst_35 {dimension_numbers = #tpu.dot_dimension_numbers<[1], [0], [0], [1], [0, 0, 1, 1], [], []>} : vector<24x128xf32>, vector<128x4xf32>, vector<24x4xf32> -> vector<24x4xf32>
    %c3_i32 = arith.constant 3 : i32
    %48 = tpu.dynamic_rotate %47 by %c3_i32 dim 0 : vector<24x4xf32>, i32 -> vector<24x4xf32>
    %c3_i32_36 = arith.constant 3 : i32
    %49 = vector.broadcast %c3_i32_36 : i32 to vector<24x4xi32>
    %50 = arith.cmpi sge, %8, %49 : vector<24x4xi32>
    %cst_37 = arith.constant 0.000000e+00 : f32
    %51 = vector.broadcast %cst_37 : f32 to vector<24x4xf32>
    %52 = arith.select %50, %48, %51 : vector<24x4xi1>, vector<24x4xf32>
    %53 = arith.addf %37, %52 : vector<24x4xf32>
    %c0_38 = arith.constant 0 : index
    %c0_39 = arith.constant 0 : index
    %54 = vector.load %arg6[%c0_38, %c0_39] : memref<24x4xf32, #tpu.memory_space<vmem>>, vector<24x4xf32>
    %c3_i32_40 = arith.constant 3 : i32
    %55 = vector.broadcast %c3_i32_40 : i32 to vector<24x4xi32>
    %56 = arith.cmpi slt, %8, %55 : vector<24x4xi32>
    %cst_41 = arith.constant 0.000000e+00 : f32
    %57 = vector.broadcast %cst_41 : f32 to vector<24x4xf32>
    %58 = arith.select %56, %48, %57 : vector<24x4xi1>, vector<24x4xf32>
    %59 = arith.addf %54, %58 : vector<24x4xf32>
    %c0_42 = arith.constant 0 : index
    %c0_43 = arith.constant 0 : index
    %60 = vector.load %arg6[%c0_42, %c0_43] : memref<24x4xf32, #tpu.memory_space<vmem>>, vector<24x4xf32>
    tpu.vector_store %arg6[%c0_42, %c0_43], %59 {strides = array<i32>} : memref<24x4xf32, #tpu.memory_space<vmem>>, vector<24x4xf32>,
    %c0_44 = arith.constant 0 : index
    %c0_45 = arith.constant 0 : index
    %61 = vector.load %arg4[%c0_44, %c0_45] : memref<24x4xf32, #tpu.memory_space<vmem>>, vector<24x4xf32>
    %62 = arith.mulf %53, %61 : vector<24x4xf32>
    %c0_46 = arith.constant 0 : index
    %c0_47 = arith.constant 0 : index
    %c0_48 = arith.constant 0 : index
    %63 = vector.load %arg5[%c0_46, %c0_47, %c0_48] : memref<1x24x4xf32, #tpu.memory_space<vmem>>, vector<1x24x4xf32>
    %64 = vector.shape_cast %63 : vector<1x24x4xf32> to vector<24x4xf32>
    %65 = vector.shape_cast %62 : vector<24x4xf32> to vector<1x24x4xf32>
    tpu.vector_store %arg5[%c0_46, %c0_47, %c0_48], %65 {strides = array<i32>} : memref<1x24x4xf32, #tpu.memory_space<vmem>>, vector<1x24x4xf32>,
    return
  }
  func.func @transform_0(%arg0: i32, %arg1: i32) -> (i32, i32, i32) {
    %c0_i32 = arith.constant 0 : i32
    %c0_i32_0 = arith.constant 0 : i32
    return %arg0, %arg1, %c0_i32 : i32, i32, i32
  }
  func.func @transform_1(%arg0: i32, %arg1: i32) -> (i32, i32, i32) {
    %c0_i32 = arith.constant 0 : i32
    %c0_i32_0 = arith.constant 0 : i32
    %c0_i32_1 = arith.constant 0 : i32
    %c0_i32_2 = arith.constant 0 : i32
    return %c0_i32, %c0_i32_0, %c0_i32_1 : i32, i32, i32
  }
  func.func @transform_2(%arg0: i32, %arg1: i32) -> (i32, i32) {
    %c0_i32 = arith.constant 0 : i32
    %c0_i32_0 = arith.constant 0 : i32
    return %arg1, %c0_i32 : i32, i32
  }
  func.func @transform_3(%arg0: i32, %arg1: i32) -> (i32, i32, i32) {
    %c0_i32 = arith.constant 0 : i32
    %c0_i32_0 = arith.constant 0 : i32
    return %arg0, %arg1, %c0_i32 : i32, i32, i32
  }
}

</mosaic_0001>

<bundles_post_ra>
// kernel: stft_forward.2
= control target key start
LH: loop header
LB: loop body
LE: loop exit
PB: predicated region body
PF: predicated region fallthrough
CT: control target
= control target key end

     0   :  { %s541_s9 = smov 0   ;;  %s543_s10 = smov 0   ;;  %s668_s0 = inlined_call_operand.vmem [shape: f32[2,24,128], index: 0, kind: input, shape index: {}]   ;;  %s669_s1 = inlined_call_operand.vmem [shape: f32[128,128], index: 1, kind: input, shape index: {}]   ;;  %s670_s2 = inlined_call_operand.vmem [shape: f32[2,24,128], index: 2, kind: output, shape index: {}]  }
   0x1   :  { %s545_s11 = smov 0  }
   0x2 LB: > { %s24_s12 = sadd.s32 1, %s518_s10  ;;  %p376_p0 = scmp.ge.s32.totalorder %s522_s11, 1  ;;  %s522_s11 = sphi %s545_s11, %s12_s11   ;;  %s518_s10 = sphi %s543_s10, %s672_s10   ;;  %s514_s9 = sphi %s541_s9, %s671_s9  }
   0x3   : > { %p26_p1 = scmp.ge.s32.totalorder %s24_s12, 2  ;;  %p133_p2 = scmp.lt.s32.totalorder %s522_s11, 3 }
   0x5   : > { %s674_s12 = smov (%p26_p1, %s24_s12), 0  ;;  %p134_p3 = pnand %p376_p0, %p133_p2 }
   0x6   : > { %p164_p4 = scmp.lt.s32.totalorder (!%p134_p3), %s514_s9, 1 }
   0x7   : > { %137 = sbr.rel (%p134_p3) target bundleno = 244 (0xf4), region = 28 }
   0xc   : > { %v201_v0 = vld [vmem:[%s669_s1 + $0x78] sm:$0xff]  ;;  %v524_v1 = vmov 0.0   ;;  %v200_v2 = vld [vmem:[%s669_s1 + $0x70] sm:$0xff]  ;;  %v199_v3 = vld [vmem:[%s669_s1 + $0x68] sm:$0xff]  ;;  %s676_s9 = smov (!%p164_p4, %s514_s9), 1  ;;  %vm525_vm0 = vmmov 0  }
   0xd   : > { %441 = vmatprep.subr.mxu1 %v524_v1  ;;  %400 = vmatprep.subr.mxu0 %v524_v1  ;;  %v198_v4 = vld [vmem:[%s669_s1 + $0x60] sm:$0xff]  ;;  %v197_v5 = vld [vmem:[%s669_s1 + $0x58] sm:$0xff]  ;;  %v196_v6 = vld [vmem:[%s669_s1 + $0x50] sm:$0xff]  ;;  %s473_s15 = smul.u32 24, %s676_s9 }
   0xe   : > { %457 = vmatpush3.msra.mxu1 %v201_v0  ;;  %401 = vmatpush3.msra.mxu0 %v201_v0  ;;  %v195_v7 = vld [vmem:[%s669_s1 + $0x48] sm:$0xff]  ;;  %v194_v8 = vld [vmem:[%s669_s1 + $0x40] sm:$0xff]  ;;  %v193_v9 = vld [vmem:[%s669_s1 + $0x38] sm:$0xff] }
   0xf   : > { %442 = vmatprep.subr.mxu1 %v524_v1  ;;  %402 = vmatprep.subr.mxu0 %v524_v1  ;;  %v192_v10 = vld [vmem:[%s669_s1 + $0x30] sm:$0xff]  ;;  %v191_v11 = vld [vmem:[%s669_s1 + $0x28] sm:$0xff]  ;;  %v190_v12 = vld [vmem:[%s669_s1 + $0x20] sm:$0xff]  ;;  %s171_s22 = scalar_lea.vmem %s668_s0, %s473_s15  ;;  %s181_s27 = scalar_lea.vmem %s670_s2, %s473_s15 }
  0x10   : > { %458 = vmatpush3.msra.mxu1 %v200_v2  ;;  %403 = vmatpush3.msra.mxu0 %v200_v2  ;;  %v189_v13 = vld [vmem:[%s669_s1 + $0x18] sm:$0xff]  ;;  %v188_v14 = vld [vmem:[%s669_s1 + $0x10] sm:$0xff]  ;;  %v187_v15 = vld [vmem:[%s669_s1 + $0x8] sm:$0xff] }
  0x11   : > { %443 = vmatprep.subr.mxu1 %v524_v1  ;;  %404 = vmatprep.subr.mxu0 %v524_v1  ;;  %v186_v16 = vld [vmem:[%s669_s1] sm:$0xff]  ;;  %v184_v17 = vld [vmem:[%s171_s22 + $0x8] sm:$0xff]  ;;  %v185_v19 = vld [vmem:[%s171_s22 + $0x10] sm:$0xff] }
  0x12   : > { %459 = vmatpush3.msra.mxu1 %v199_v3  ;;  %405 = vmatpush3.msra.mxu0 %v199_v3  ;;  %v183_v18 = vld [vmem:[%s171_s22] sm:$0xff] }
  0x13   : > { %444 = vmatprep.subr.mxu1 %v524_v1  ;;  %406 = vmatprep.subr.mxu0 %v524_v1 }
  0x14   : > { %460 = vmatpush3.msra.mxu1 %v198_v4  ;;  %407 = vmatpush3.msra.mxu0 %v198_v4 }
  0x15   : > { %445 = vmatprep.subr.mxu1 %v524_v1  ;;  %408 = vmatprep.subr.mxu0 %v524_v1 }
  0x16   : > { %461 = vmatpush3.msra.mxu1 %v197_v5  ;;  %409 = vmatpush3.msra.mxu0 %v197_v5 }
  0x17   : > { %446 = vmatprep.subr.mxu1 %v524_v1  ;;  %410 = vmatprep.subr.mxu0 %v524_v1 }
  0x18   : > { %462 = vmatpush3.msra.mxu1 %v196_v6  ;;  %411 = vmatpush3.msra.mxu0 %v196_v6 }
  0x19   : > { %447 = vmatprep.subr.mxu1 %v524_v1  ;;  %412 = vmatprep.subr.mxu0 %v524_v1 }
  0x1a   : > { %463 = vmatpush3.msra.mxu1 %v195_v7  ;;  %413 = vmatpush3.msra.mxu0 %v195_v7 }
  0x1b   : > { %448 = vmatprep.subr.mxu1 %v524_v1  ;;  %414 = vmatprep.subr.mxu0 %v524_v1 }
  0x1c   : > { %464 = vmatpush3.msra.mxu1 %v194_v8  ;;  %415 = vmatpush3.msra.mxu0 %v194_v8 }
  0x1d   : > { %449 = vmatprep.subr.mxu1 %v524_v1  ;;  %416 = vmatprep.subr.mxu0 %v524_v1 }
  0x1e   : > { %465 = vmatpush3.msra.mxu1 %v193_v9  ;;  %417 = vmatpush3.msra.mxu0 %v193_v9 }
  0x1f   : > { %450 = vmatprep.subr.mxu1 %v524_v1  ;;  %418 = vmatprep.subr.mxu0 %v524_v1 }
  0x20   : > { %466 = vmatpush3.msra.mxu1 %v192_v10  ;;  %419 = vmatpush3.msra.mxu0 %v192_v10 }
  0x21   : > { %451 = vmatprep.subr.mxu1 %v524_v1  ;;  %420 = vmatprep.subr.mxu0 %v524_v1 }
  0x22   : > { %467 = vmatpush3.msra.mxu1 %v191_v11  ;;  %421 = vmatpush3.msra.mxu0 %v191_v11 }
  0x23   : > { %452 = vmatprep.subr.mxu1 %v524_v1  ;;  %422 = vmatprep.subr.mxu0 %v524_v1 }
  0x24   : > { %468 = vmatpush3.msra.mxu1 %v190_v12  ;;  %423 = vmatpush3.msra.mxu0 %v190_v12 }
  0x25   : > { %453 = vmatprep.subr.mxu1 %v524_v1  ;;  %424 = vmatprep.subr.mxu0 %v524_v1 }
  0x26   : > { %469 = vmatpush3.msra.mxu1 %v189_v13  ;;  %425 = vmatpush3.msra.mxu0 %v189_v13 }
  0x27   : > { %454 = vmatprep.subr.mxu1 %v524_v1  ;;  %426 = vmatprep.subr.mxu0 %v524_v1 }
  0x28   : > { %470 = vmatpush3.msra.mxu1 %v188_v14  ;;  %427 = vmatpush3.msra.mxu0 %v188_v14 }
  0x29   : > { %455 = vmatprep.subr.mxu1 %v524_v1  ;;  %428 = vmatprep.subr.mxu0 %v524_v1 }
  0x2a   : > { %471 = vmatpush3.msra.mxu1 %v187_v15  ;;  %429 = vmatpush3.msra.mxu0 %v187_v15 }
  0x2b   : > { %456 = vmatprep.subr.mxu1 %v524_v1  ;;  %435 = vmatprep.mubr.msk.f32.mxu1 %vm525_vm0, %v524_v1 }
  0x2c   : > { %472 = vmatpush3.msra.mxu1 %v186_v16  ;;  %430 = vmatprep.subr.mxu0 %v524_v1 }
  0x2d   : > { %436 = vmatmul.mubr.f32.vlgmr.msra.gmra.mxu1 %v184_v17  ;;  %431 = vmatpush3.msra.mxu0 %v186_v16 }
  0x2e   : > { %432 = vmatprep.mubr.msk.f32.mxu0 %vm525_vm0, %v524_v1  ;;  %438 = vmatprep.mubr.msk.f32.mxu1 %vm525_vm0, %v524_v1 }
  0x2f   : > { %433 = vmatmul.mubr.f32.vlgmr.msra.gmra.mxu0 %v183_v18 }
  0x31   : > { %439 = vmatmul.mubr.f32.gmra.mxu1 %v185_v19 }
  0xed   : > { %v273_v20 = vpop.f32.mrf.mxu1 }
  0xee   : > { %283 = vst [vmem:[%s181_s27 + $0x8] sm:$0xff] %v273_v20 }
  0xef   : > { %v268_v21 = vpop.f32.mrf.mxu0  ;;  %v437_v22 = vpop.f32.mrf.mxu1 }
  0xf0   : > { %282 = vst [vmem:[%s181_s27] sm:$0xff] %v268_v21 }
  0xf1   : > { %v434_v23 = vpop.f32.mrf.mxu0  ;;  %v278_v24 = vpop.f32.mrf.mxu1 }
  0xf2   : > { %284 = vst [vmem:[%s181_s27 + $0x10] sm:$0xff] %v278_v24 }
  0xf3   : > { %v440_v25 = vpop.f32.mrf.mxu1 }
  0xf4 PF: > { %s12_s11 = sadd.s32 1, %s522_s11   ;;  %s671_s9 = smov %s518_s10 }
  0xf5   : > { %p9_p5 = scmp.ge.s32.totalorder %s12_s11, 4   ;;  %s672_s10 = smov %s674_s12 }
  0xf7   :  { %11 = sbr.rel (!%p9_p5) target bundleno = 2 (0x2), region = 58 }

// kernel: stft_forward.3
= control target key start
LH: loop header
LB: loop body
LE: loop exit
PB: predicated region body
PF: predicated region fallthrough
CT: control target
= control target key end

     0   :  { %s1216_s12 = smov 0   ;;  %s1218_s13 = smov 0   ;;  %s1633_s0 = inlined_call_operand.vmem [shape: f32[2,24,128], index: 0, kind: input, shape index: {}]   ;;  %s1634_s1 = inlined_call_operand.vmem [shape: f32[4,128,4], index: 1, kind: input, shape index: {}]   ;;  %s1635_s2 = inlined_call_operand.vmem [shape: f32[24,4], index: 2, kind: input, shape index: {}]   ;;  %s1636_s3 = inlined_call_operand.vmem [shape: f32[2,24,4], index: 3, kind: output, shape index: {}]  }
   0x1   :  { %s1220_s14 = smov 0  }
   0x2 LB: > { %s25_s15 = sadd.s32 1, %s1188_s13  ;;  %p850_p0 = scmp.ge.s32.totalorder %s1192_s14, 1  ;;  %s1192_s14 = sphi %s1220_s14, %s13_s14   ;;  %s1188_s13 = sphi %s1218_s13, %s1638_s13   ;;  %s1184_s12 = sphi %s1216_s12, %s1637_s12  }
   0x3   : > { %p27_p1 = scmp.ge.s32.totalorder %s25_s15, 2  ;;  %p169_p2 = scmp.lt.s32.totalorder %s1192_s14, 3 }
   0x5   : > { %s1640_s15 = smov (%p27_p1, %s25_s15), 0  ;;  %p170_p3 = pnand %p850_p0, %p169_p2 }
   0x6   : > { %p207_p4 = scmp.lt.s32.totalorder (!%p170_p3), %s1184_s12, 1 }
   0x7   : > { %173 = sbr.rel (%p170_p3) target bundleno = 302 (0x12e), region = 32 }
   0xc   : > { %v269_v0 = vld [vmem:[%s1634_s1 + $0x78] sm:$0xff]  ;;  %v1194_v2 = vmov 0.0   ;;  %v268_v3 = vld [vmem:[%s1634_s1 + $0x70] sm:$0xff]  ;;  %vm236_vm0 = vcmask 31744   ;;  %v267_v5 = vld [vmem:[%s1634_s1 + $0x68] sm:$0xff]  ;;  %s1642_s12 = smov (!%p207_p4, %s1184_s12), 1 }
   0xd   : > { %v868_v1 = vld [vmem:[%s1634_s1 + $0xf8] sm:$0xff]  ;;  %979 = vmatprep.subr.mxu0 %v1194_v2  ;;  %1020 = vmatprep.subr.mxu1 %v1194_v2  ;;  %v867_v4 = vld [vmem:[%s1634_s1 + $0xf0] sm:$0xff]  ;;  %237 = vst.msk [vmem:[#allocation2] sm:$0xff] %vm236_vm0, %v1194_v2  ;;  %238 = vst.msk [vmem:[#allocation2 + $0x8] sm:$0xff] %vm236_vm0, %v1194_v2  ;;  %s1143_s22 = smul.u32 24, %s1642_s12  ;;  %vm1195_vm1 = vmmov 0  }
   0xe   : > { %980 = vmatpush3.msra.mxu0 %v269_v0  ;;  %1021 = vmatpush3.msra.mxu1 %v868_v1  ;;  %239 = vst.msk [vmem:[#allocation2 + $0x10] sm:$0xff] %vm236_vm0, %v1194_v2  ;;  %v866_v6 = vld [vmem:[%s1634_s1 + $0xe8] sm:$0xff]  ;;  %v266_v7 = vld [vmem:[%s1634_s1 + $0x60] sm:$0xff]  ;;  %v265_v9 = vld [vmem:[%s1634_s1 + $0x58] sm:$0xff] }
   0xf   : > { %981 = vmatprep.subr.mxu0 %v1194_v2  ;;  %1022 = vmatprep.subr.mxu1 %v1194_v2  ;;  %v865_v8 = vld [vmem:[%s1634_s1 + $0xe0] sm:$0xff]  ;;  %v864_v10 = vld [vmem:[%s1634_s1 + $0xd8] sm:$0xff]  ;;  %v264_v11 = vld [vmem:[%s1634_s1 + $0x50] sm:$0xff]  ;;  %s1374_s6 = scalar_lea.vmem %s1633_s0, %s1143_s22  ;;  %s230_s17 = scalar_lea.vmem %s1636_s3, %s1143_s22 }
  0x10   : > { %982 = vmatpush3.msra.mxu0 %v268_v3  ;;  %1023 = vmatpush3.msra.mxu1 %v867_v4  ;;  %v863_v12 = vld [vmem:[%s1634_s1 + $0xd0] sm:$0xff]  ;;  %v263_v13 = vld [vmem:[%s1634_s1 + $0x48] sm:$0xff]  ;;  %v262_v15 = vld [vmem:[%s1634_s1 + $0x40] sm:$0xff] }
  0x11   : > { %983 = vmatprep.subr.mxu0 %v1194_v2  ;;  %1024 = vmatprep.subr.mxu1 %v1194_v2  ;;  %v862_v14 = vld [vmem:[%s1634_s1 + $0xc8] sm:$0xff]  ;;  %v861_v16 = vld [vmem:[%s1634_s1 + $0xc0] sm:$0xff]  ;;  %v261_v17 = vld [vmem:[%s1634_s1 + $0x38] sm:$0xff] }
  0x12   : > { %984 = vmatpush3.msra.mxu0 %v267_v5  ;;  %1025 = vmatpush3.msra.mxu1 %v866_v6  ;;  %v860_v18 = vld [vmem:[%s1634_s1 + $0xb8] sm:$0xff]  ;;  %v260_v19 = vld [vmem:[%s1634_s1 + $0x30] sm:$0xff]  ;;  %v259_v21 = vld [vmem:[%s1634_s1 + $0x28] sm:$0xff] }
  0x13   : > { %985 = vmatprep.subr.mxu0 %v1194_v2  ;;  %1026 = vmatprep.subr.mxu1 %v1194_v2  ;;  %v859_v20 = vld [vmem:[%s1634_s1 + $0xb0] sm:$0xff]  ;;  %v858_v22 = vld [vmem:[%s1634_s1 + $0xa8] sm:$0xff]  ;;  %v258_v23 = vld [vmem:[%s1634_s1 + $0x20] sm:$0xff] }
  0x14   : > { %986 = vmatpush3.msra.mxu0 %v266_v7  ;;  %1027 = vmatpush3.msra.mxu1 %v865_v8  ;;  %v857_v24 = vld [vmem:[%s1634_s1 + $0xa0] sm:$0xff]  ;;  %v257_v26 = vld [vmem:[%s1634_s1 + $0x18] sm:$0xff]  ;;  %v256_v28 = vld [vmem:[%s1634_s1 + $0x10] sm:$0xff] }
  0x15   : > { %987 = vmatprep.subr.mxu0 %v1194_v2  ;;  %1028 = vmatprep.subr.mxu1 %v1194_v2  ;;  %v1340_v25 = vld [vmem:[#allocation2] sm:$0xff]  ;;  %v856_v27 = vld [vmem:[%s1634_s1 + $0x98] sm:$0xff]  ;;  %v855_v29 = vld [vmem:[%s1634_s1 + $0x90] sm:$0xff] }
  0x16   : > { %988 = vmatpush3.msra.mxu0 %v265_v9  ;;  %1029 = vmatpush3.msra.mxu1 %v864_v10  ;;  %247 = vst.msk [vmem:[#allocation2] sm:$0xff] %vm236_vm0, %v1194_v2  ;;  %v255_v30 = vld [vmem:[%s1634_s1 + $0x8] sm:$0xff]  ;;  %v254_v32 = vld [vmem:[%s1634_s1] sm:$0xff]  ;;  %v884_v35 = vld [vmem:[%s1634_s1 + $0x178] sm:$0xff] }
  0x17   : > { %989 = vmatprep.subr.mxu0 %v1194_v2  ;;  %1030 = vmatprep.subr.mxu1 %v1194_v2  ;;  %v854_v31 = vld [vmem:[%s1634_s1 + $0x88] sm:$0xff]  ;;  %v853_v33 = vld [vmem:[%s1634_s1 + $0x80] sm:$0xff]  ;;  %v900_v36 = vld [vmem:[%s1634_s1 + $0x1f8] sm:$0xff] }
  0x18   : > { %990 = vmatpush3.msra.mxu0 %v264_v11  ;;  %1031 = vmatpush3.msra.mxu1 %v863_v12  ;;  %v1387_v34 = vld [vmem:[%s1374_s6] sm:$0xff]  ;;  %v883_v37 = vld [vmem:[%s1634_s1 + $0x170] sm:$0xff]  ;;  %v1412_v39 = vld [vmem:[%s1374_s6 + $0x8] sm:$0xff] }
  0x19   : > { %991 = vmatprep.subr.mxu0 %v1194_v2  ;;  %1032 = vmatprep.subr.mxu1 %v1194_v2  ;;  %v899_v38 = vld [vmem:[%s1634_s1 + $0x1f0] sm:$0xff]  ;;  %v882_v40 = vld [vmem:[%s1634_s1 + $0x168] sm:$0xff]  ;;  %v881_v42 = vld [vmem:[%s1634_s1 + $0x160] sm:$0xff] }
  0x1a   : > { %992 = vmatpush3.msra.mxu0 %v263_v13  ;;  %1033 = vmatpush3.msra.mxu1 %v862_v14  ;;  %v898_v41 = vld [vmem:[%s1634_s1 + $0x1e8] sm:$0xff]  ;;  %v897_v43 = vld [vmem:[%s1634_s1 + $0x1e0] sm:$0xff]  ;;  %v1434_v44 = vld [vmem:[%s1374_s6 + $0x10] sm:$0xff] }
  0x1b   : > { %993 = vmatprep.subr.mxu0 %v1194_v2  ;;  %1034 = vmatprep.subr.mxu1 %v1194_v2  ;;  %v880_v45 = vld [vmem:[%s1634_s1 + $0x158] sm:$0xff]  ;;  %v879_v47 = vld [vmem:[%s1634_s1 + $0x150] sm:$0xff]  ;;  %v878_v49 = vld [vmem:[%s1634_s1 + $0x148] sm:$0xff] }
  0x1c   : > { %994 = vmatpush3.msra.mxu0 %v262_v15  ;;  %1035 = vmatpush3.msra.mxu1 %v861_v16  ;;  %v896_v46 = vld [vmem:[%s1634_s1 + $0x1d8] sm:$0xff]  ;;  %v895_v48 = vld [vmem:[%s1634_s1 + $0x1d0] sm:$0xff]  ;;  %v894_v50 = vld [vmem:[%s1634_s1 + $0x1c8] sm:$0xff] }
  0x1d   : > { %995 = vmatprep.subr.mxu0 %v1194_v2  ;;  %1036 = vmatprep.subr.mxu1 %v1194_v2  ;;  %v877_v51 = vld [vmem:[%s1634_s1 + $0x140] sm:$0xff]  ;;  %v876_v53 = vld [vmem:[%s1634_s1 + $0x138] sm:$0xff]  ;;  %v875_v55 = vld [vmem:[%s1634_s1 + $0x130] sm:$0xff] }
  0x1e   : > { %996 = vmatpush3.msra.mxu0 %v261_v17  ;;  %1037 = vmatpush3.msra.mxu1 %v860_v18  ;;  %v893_v52 = vld [vmem:[%s1634_s1 + $0x1c0] sm:$0xff]  ;;  %v892_v54 = vld [vmem:[%s1634_s1 + $0x1b8] sm:$0xff]  ;;  %v891_v56 = vld [vmem:[%s1634_s1 + $0x1b0] sm:$0xff]  ;;  %v250_v17 = vlaneseq }
  0x1f   : > { %997 = vmatprep.subr.mxu0 %v1194_v2  ;;  %1038 = vmatprep.subr.mxu1 %v1194_v2  ;;  %v874_v57 = vld [vmem:[%s1634_s1 + $0x128] sm:$0xff]  ;;  %v873_v59 = vld [vmem:[%s1634_s1 + $0x120] sm:$0xff]  ;;  %v872_v61 = vld [vmem:[%s1634_s1 + $0x118] sm:$0xff] }
  0x20   : > { %998 = vmatpush3.msra.mxu0 %v260_v19  ;;  %1039 = vmatpush3.msra.mxu1 %v859_v20  ;;  %v890_v58 = vld [vmem:[%s1634_s1 + $0x1a8] sm:$0xff]  ;;  %v889_v60 = vld [vmem:[%s1634_s1 + $0x1a0] sm:$0xff]  ;;  %v888_v62 = vld [vmem:[%s1634_s1 + $0x198] sm:$0xff]  ;;  %v1569_v19 = vshrl.u32 %v250_v17, 7 }
  0x21   : > { %999 = vmatprep.subr.mxu0 %v1194_v2  ;;  %1040 = vmatprep.subr.mxu1 %v1194_v2  ;;  %v871_v63 = vld [vmem:[%s1634_s1 + $0x110] sm:$0xff]  ;;  %v870_v1 = vld [vmem:[%s1634_s1 + $0x108] sm:$0xff]  ;;  %v869_v4 = vld [vmem:[%s1634_s1 + $0x100] sm:$0xff] }
  0x22   : > { %1000 = vmatpush3.msra.mxu0 %v259_v21  ;;  %1041 = vmatpush3.msra.mxu1 %v858_v22  ;;  %v887_v0 = vld [vmem:[%s1634_s1 + $0x190] sm:$0xff]  ;;  %v886_v3 = vld [vmem:[%s1634_s1 + $0x188] sm:$0xff]  ;;  %v885_v5 = vld [vmem:[%s1634_s1 + $0x180] sm:$0xff]  ;;  %vm453_vm2 = vcmp.lt.s32.totalorder %v1569_v19, 1  ;;  %vm457_vm3 = vcmp.ge.s32.totalorder %v1569_v19, 1  ;;  %vm580_vm4 = vcmp.lt.s32.totalorder %v1569_v19, 2 }
  0x23   : > { %1001 = vmatprep.subr.mxu0 %v1194_v2  ;;  %1042 = vmatprep.subr.mxu1 %v1194_v2  ;;  %v244_v6 = vld [vmem:[#allocation2 + $0x8] sm:$0xff]  ;;  %v245_v7 = vld [vmem:[#allocation2 + $0x10] sm:$0xff]  ;;  %vm707_vm5 = vcmp.lt.s32.totalorder %v1569_v19, 3  ;;  %vm584_vm6 = vcmp.ge.s32.totalorder %v1569_v19, 2  ;;  %vm711_vm7 = vcmp.ge.s32.totalorder %v1569_v19, 3 }
  0x24   : > { %1002 = vmatpush3.msra.mxu0 %v258_v23  ;;  %1043 = vmatpush3.msra.mxu1 %v857_v24  ;;  %248 = vst.msk [vmem:[#allocation2 + $0x8] sm:$0xff] %vm236_vm0, %v1194_v2  ;;  %249 = vst.msk [vmem:[#allocation2 + $0x10] sm:$0xff] %vm236_vm0, %v1194_v2  ;;  %v466_v24 = vld [vmem:[#allocation2] sm:$0xff] }
  0x25   : > { %1003 = vmatprep.subr.mxu0 %v1194_v2  ;;  %1044 = vmatprep.subr.mxu1 %v1194_v2 }
  0x26   : > { %1004 = vmatpush3.msra.mxu0 %v257_v26  ;;  %1045 = vmatpush3.msra.mxu1 %v856_v27 }
  0x27   : > { %1005 = vmatprep.subr.mxu0 %v1194_v2  ;;  %1046 = vmatprep.subr.mxu1 %v1194_v2 }
  0x28   : > { %1006 = vmatpush3.msra.mxu0 %v256_v28  ;;  %1047 = vmatpush3.msra.mxu1 %v855_v29 }
  0x29   : > { %1007 = vmatprep.subr.mxu0 %v1194_v2  ;;  %1048 = vmatprep.subr.mxu1 %v1194_v2 }
  0x2a   : > { %1008 = vmatpush3.msra.mxu0 %v255_v30  ;;  %1049 = vmatpush3.msra.mxu1 %v854_v31 }
  0x2b   : > { %1009 = vmatprep.subr.mxu0 %v1194_v2  ;;  %1050 = vmatprep.subr.mxu1 %v1194_v2  ;;  %v467_v8 = vld [vmem:[#allocation2 + $0x8] sm:$0xff]  ;;  %v468_v10 = vld [vmem:[#allocation2 + $0x10] sm:$0xff] }
  0x2c   : > { %1010 = vmatpush3.msra.mxu0 %v254_v32  ;;  %1011 = vmatprep.mubr.msk.f32.mxu0 %vm1195_vm1, %v1194_v2  ;;  %478 = vst.msk [vmem:[#allocation2 + $0x8] sm:$0xff] %vm236_vm0, %v467_v8  ;;  %479 = vst.msk [vmem:[#allocation2 + $0x10] sm:$0xff] %vm236_vm0, %v468_v10 }
  0x2d   : > { %1051 = vmatpush3.msra.mxu1 %v853_v33  ;;  %1052 = vmatprep.mubr.msk.f32.mxu1 %vm1195_vm1, %v1194_v2 }
  0x2e   : > { %1012 = vmatmul.mubr.f32.vlgmr.msra.gmra.mxu0 %v1387_v34  ;;  %1053 = vmatmul.mubr.f32.vlgmr.msra.gmra.mxu1 %v1387_v34 }
  0x2f   : > { %1061 = vmatprep.subr.mxu0 %v1194_v2  ;;  %1102 = vmatprep.subr.mxu1 %v1194_v2 }
  0x30   : > { %1062 = vmatpush3.msra.mxu0 %v884_v35  ;;  %1103 = vmatpush3.msra.mxu1 %v900_v36 }
  0x31   : > { %1063 = vmatprep.subr.mxu0 %v1194_v2  ;;  %1104 = vmatprep.subr.mxu1 %v1194_v2 }
  0x32   : > { %1055 = vmatprep.mubr.msk.f32.mxu1 %vm1195_vm1, %v1194_v2  ;;  %1064 = vmatpush3.msra.mxu0 %v883_v37 }
  0x33   : > { %1105 = vmatpush3.msra.mxu1 %v899_v38  ;;  %1065 = vmatprep.subr.mxu0 %v1194_v2  ;;  %v594_v9 = vld [vmem:[#allocation2 + $0x8] sm:$0xff]  ;;  %v595_v12 = vld [vmem:[#allocation2 + $0x10] sm:$0xff] }
  0x34   : > { %1056 = vmatmul.mubr.f32.gmra.mxu1 %v1412_v39  ;;  %1106 = vmatprep.subr.mxu1 %v1194_v2  ;;  %605 = vst.msk [vmem:[#allocation2 + $0x8] sm:$0xff] %vm236_vm0, %v594_v9  ;;  %606 = vst.msk [vmem:[#allocation2 + $0x10] sm:$0xff] %vm236_vm0, %v595_v12 }
  0x35   : > { %1066 = vmatpush3.msra.mxu0 %v882_v40  ;;  %1107 = vmatpush3.msra.mxu1 %v898_v41 }
  0x36   : > { %1067 = vmatprep.subr.mxu0 %v1194_v2  ;;  %1108 = vmatprep.subr.mxu1 %v1194_v2 }
  0x37   : > { %1058 = vmatprep.mubr.msk.f32.mxu1 %vm1195_vm1, %v1194_v2  ;;  %1068 = vmatpush3.msra.mxu0 %v881_v42 }
  0x38   : > { %1109 = vmatpush3.msra.mxu1 %v897_v43  ;;  %1069 = vmatprep.subr.mxu0 %v1194_v2 }
  0x39   : > { %1059 = vmatmul.mubr.f32.gmra.mxu1 %v1434_v44  ;;  %1110 = vmatprep.subr.mxu1 %v1194_v2 }
  0x3a   : > { %1014 = vmatprep.mubr.msk.f32.mxu0 %vm1195_vm1, %v1194_v2  ;;  %1070 = vmatpush3.msra.mxu0 %v880_v45 }
  0x3b   : > { %1111 = vmatpush3.msra.mxu1 %v896_v46  ;;  %1015 = vmatmul.mubr.f32.gmra.mxu0 %v1412_v39  ;;  %v721_v11 = vld [vmem:[#allocation2 + $0x8] sm:$0xff]  ;;  %v722_v13 = vld [vmem:[#allocation2 + $0x10] sm:$0xff] }
  0x3c   : > { %1071 = vmatprep.subr.mxu0 %v1194_v2  ;;  %1112 = vmatprep.subr.mxu1 %v1194_v2  ;;  %732 = vst.msk [vmem:[#allocation2 + $0x8] sm:$0xff] %vm236_vm0, %v721_v11  ;;  %733 = vst.msk [vmem:[#allocation2 + $0x10] sm:$0xff] %vm236_vm0, %v722_v13 }
  0x3d   : > { %1072 = vmatpush3.msra.mxu0 %v879_v47  ;;  %1113 = vmatpush3.msra.mxu1 %v895_v48 }
  0x3e   : > { %1073 = vmatprep.subr.mxu0 %v1194_v2  ;;  %1114 = vmatprep.subr.mxu1 %v1194_v2 }
  0x3f   : > { %1074 = vmatpush3.msra.mxu0 %v878_v49  ;;  %1115 = vmatpush3.msra.mxu1 %v894_v50 }
  0x40   : > { %1075 = vmatprep.subr.mxu0 %v1194_v2  ;;  %1116 = vmatprep.subr.mxu1 %v1194_v2 }
  0x41   : > { %1076 = vmatpush3.msra.mxu0 %v877_v51  ;;  %1117 = vmatpush3.msra.mxu1 %v893_v52 }
  0x42   : > { %1077 = vmatprep.subr.mxu0 %v1194_v2  ;;  %1118 = vmatprep.subr.mxu1 %v1194_v2 }
  0x43   : > { %1078 = vmatpush3.msra.mxu0 %v876_v53  ;;  %1119 = vmatpush3.msra.mxu1 %v892_v54 }
  0x44   : > { %1079 = vmatprep.subr.mxu0 %v1194_v2  ;;  %1120 = vmatprep.subr.mxu1 %v1194_v2 }
  0x45   : > { %1080 = vmatpush3.msra.mxu0 %v875_v55  ;;  %1121 = vmatpush3.msra.mxu1 %v891_v56 }
  0x46   : > { %1081 = vmatprep.subr.mxu0 %v1194_v2  ;;  %1122 = vmatprep.subr.mxu1 %v1194_v2 }
  0x47   : > { %1082 = vmatpush3.msra.mxu0 %v874_v57  ;;  %1123 = vmatpush3.msra.mxu1 %v890_v58 }
  0x48   : > { %1083 = vmatprep.subr.mxu0 %v1194_v2  ;;  %1124 = vmatprep.subr.mxu1 %v1194_v2 }
  0x49   : > { %1084 = vmatpush3.msra.mxu0 %v873_v59  ;;  %1125 = vmatpush3.msra.mxu1 %v889_v60  ;;  %v735_v59 = vld [vmem:[%s1635_s2 + $0x8] sm:$0xff] }
  0x4a   : > { %1085 = vmatprep.subr.mxu0 %v1194_v2  ;;  %1126 = vmatprep.subr.mxu1 %v1194_v2 }
  0x4b   : > { %1017 = vmatprep.mubr.msk.f32.mxu0 %vm1195_vm1, %v1194_v2  ;;  %1086 = vmatpush3.msra.mxu0 %v872_v61 }
  0x4c   : > { %1127 = vmatpush3.msra.mxu1 %v888_v62  ;;  %1018 = vmatmul.mubr.f32.gmra.mxu0 %v1434_v44 }
  0x4d   : > { %1087 = vmatprep.subr.mxu0 %v1194_v2  ;;  %1128 = vmatprep.subr.mxu1 %v1194_v2 }
  0x4e   : > { %1088 = vmatpush3.msra.mxu0 %v871_v63  ;;  %1129 = vmatpush3.msra.mxu1 %v887_v0 }
  0x4f   : > { %1089 = vmatprep.subr.mxu0 %v1194_v2  ;;  %1130 = vmatprep.subr.mxu1 %v1194_v2 }
  0x50   : > { %1090 = vmatpush3.msra.mxu0 %v870_v1  ;;  %1131 = vmatpush3.msra.mxu1 %v886_v3 }
  0x51   : > { %1091 = vmatprep.subr.mxu0 %v1194_v2  ;;  %1132 = vmatprep.subr.mxu1 %v1194_v2 }
  0x52   : > { %1092 = vmatpush3.msra.mxu0 %v869_v4  ;;  %1093 = vmatprep.mubr.msk.f32.mxu0 %vm1195_vm1, %v1194_v2 }
  0x53   : > { %1133 = vmatpush3.msra.mxu1 %v885_v5  ;;  %1134 = vmatprep.mubr.msk.f32.mxu1 %vm1195_vm1, %v1194_v2 }
  0x54   : > { %1094 = vmatmul.mubr.f32.vlgmr.msra.gmra.mxu0 %v1387_v34  ;;  %1135 = vmatmul.mubr.f32.vlgmr.msra.gmra.mxu1 %v1387_v34 }
  0x55   : > { %1096 = vmatprep.mubr.msk.f32.mxu0 %vm1195_vm1, %v1194_v2  ;;  %1137 = vmatprep.mubr.msk.f32.mxu1 %vm1195_vm1, %v1194_v2 }
  0x58   : > { %1097 = vmatmul.mubr.f32.gmra.mxu0 %v1412_v39  ;;  %1138 = vmatmul.mubr.f32.gmra.mxu1 %v1412_v39 }
  0x59   : > { %1099 = vmatprep.mubr.msk.f32.mxu0 %vm1195_vm1, %v1194_v2  ;;  %1140 = vmatprep.mubr.msk.f32.mxu1 %vm1195_vm1, %v1194_v2 }
  0x5c   : > { %1100 = vmatmul.mubr.f32.gmra.mxu0 %v1434_v44  ;;  %1141 = vmatmul.mubr.f32.gmra.mxu1 %v1434_v44 }
  0xee   : > { %v336_v14 = vpop.f32.mrf.mxu0  ;;  %v436_v2 = vpop.f32.mrf.mxu1 }
  0xef   : > { %v450_v21 = vrot.slane %v436_v2, 7  ;;  %v350_v55 = vadd.f32 %v336_v14, %v1340_v25  ;;  %v736_v14 = vld [vmem:[%s1635_s2 + $0x10] sm:$0xff] }
  0xf0   : > { %v1013_v15 = vpop.f32.mrf.mxu0  ;;  %v1054_v16 = vpop.f32.mrf.mxu1 }
  0xf1   : > { %v734_v16 = vld [vmem:[%s1635_s2] sm:$0xff] }
  0xf4   : > { %v441_v18 = vpop.f32.mrf.mxu1 }
  0xf5   : > { %v451_v34 = vrot.slane %v441_v18, 7 }
  0xf6   : > { %v1057_v20 = vpop.f32.mrf.mxu1 }
  0xf7   : > { %v455_v40 = vsel %vm453_vm2, %v450_v21, %v451_v34 }
  0xf9   : > { %v446_v22 = vpop.f32.mrf.mxu1 }
  0xfa   : > { %v452_v23 = vrot.slane %v446_v22, 7 }
  0xfb   : > { %v341_v26 = vpop.f32.mrf.mxu0  ;;  %v1060_v27 = vpop.f32.mrf.mxu1 }
  0xfc   : > { %v456_v28 = vsel %vm453_vm2, %v452_v23, %v450_v21  ;;  %v351_v37 = vadd.f32 %v341_v26, %v244_v6  ;;  %v454_v52 = vsel %vm453_vm2, %v451_v34, %v452_v23 }
  0xfd   : > { %v471_v29 = vsel %vm453_vm2, %v456_v28, 0.0  ;;  %v1016_v30 = vpop.f32.mrf.mxu0  ;;  %v460_v51 = vsel %vm457_vm3, %v456_v28, 0.0 }
  0xfe   : > { %v474_v31 = vadd.f32 %v471_v29, %v466_v24  ;;  %v464_v47 = vadd.f32 %v455_v40, %v351_v37  ;;  %v463_v62 = vadd.f32 %v460_v51, %v350_v55 }
 0x100   : > { %477 = vst.msk [vmem:[#allocation2] sm:$0xff] %vm236_vm0, %v474_v31 }
 0x107   : > { %v593_v10 = vld [vmem:[#allocation2] sm:$0xff] }
 0x10c   : > { %v346_v32 = vpop.f32.mrf.mxu0 }
 0x10d   : > { %v352_v48 = vadd.f32 %v346_v32, %v245_v7 }
 0x10e   : > { %v1019_v33 = vpop.f32.mrf.mxu0 }
 0x10f   : > { %v465_v63 = vadd.f32 %v454_v52, %v352_v48 }
 0x114   : > { %v563_v35 = vpop.f32.mrf.mxu0  ;;  %v690_v36 = vpop.f32.mrf.mxu1 }
 0x115   : > { %v704_v41 = vrot.slane %v690_v36, 5  ;;  %v577_v44 = vrot.slane %v563_v35, 6 }
 0x116   : > { %v1095_v38 = vpop.f32.mrf.mxu0  ;;  %v1136_v39 = vpop.f32.mrf.mxu1 }
 0x118   : > { %v568_v42 = vpop.f32.mrf.mxu0  ;;  %v695_v43 = vpop.f32.mrf.mxu1 }
 0x119   : > { %v578_v45 = vrot.slane %v568_v42, 6  ;;  %v705_v46 = vrot.slane %v695_v43, 5 }
 0x11a   : > { %v1098_v49 = vpop.f32.mrf.mxu0  ;;  %v1139_v50 = vpop.f32.mrf.mxu1 }
 0x11b   : > { %v582_v53 = vsel %vm580_vm4, %v577_v44, %v578_v45  ;;  %v709_v54 = vsel %vm707_vm5, %v704_v41, %v705_v46 }
 0x11c   : > { %v591_v56 = vadd.f32 %v582_v53, %v464_v47  ;;  %v573_v57 = vpop.f32.mrf.mxu0  ;;  %v700_v58 = vpop.f32.mrf.mxu1 }
 0x11d   : > { %v579_v60 = vrot.slane %v573_v57, 6  ;;  %v706_v61 = vrot.slane %v700_v58, 5 }
 0x11e   : > { %v718_v0 = vadd.f32 %v709_v54, %v591_v56  ;;  %v1101_v1 = vpop.f32.mrf.mxu0  ;;  %v1142_v3 = vpop.f32.mrf.mxu1 }
 0x11f   : > { %v581_v25 = vsel %vm580_vm4, %v578_v45, %v579_v60  ;;  %v583_v4 = vsel %vm580_vm4, %v579_v60, %v577_v44  ;;  %v708_v5 = vsel %vm707_vm5, %v705_v46, %v706_v61  ;;  %v710_v6 = vsel %vm707_vm5, %v706_v61, %v704_v41 }
 0x120   : > { %v738_v7 = vmul.f32 %v735_v59, %v718_v0  ;;  %v587_v8 = vsel %vm584_vm6, %v583_v4, 0.0  ;;  %v592_v9 = vadd.f32 %v581_v25, %v465_v63  ;;  %v598_v11 = vsel %vm580_vm4, %v583_v4, 0.0 }
 0x121   : > { %v590_v12 = vadd.f32 %v587_v8, %v463_v62  ;;  %v601_v13 = vadd.f32 %v598_v11, %v593_v10  ;;  %v714_v2 = vsel %vm711_vm7, %v710_v6, 0.0  ;;  %v725_v22 = vsel %vm707_vm5, %v710_v6, 0.0 }
 0x122   : > { %741 = vst.msk [vmem:[%s230_s17 + $0x8] sm:$0xff] %vm236_vm0, %v738_v7  ;;  %v719_v15 = vadd.f32 %v708_v5, %v592_v9 }
 0x123   : > { %604 = vst.msk [vmem:[#allocation2] sm:$0xff] %vm236_vm0, %v601_v13  ;;  %v717_v17 = vadd.f32 %v714_v2, %v590_v12 }
 0x124   : > { %v739_v18 = vmul.f32 %v736_v14, %v719_v15 }
 0x125   : > { %v737_v20 = vmul.f32 %v734_v16, %v717_v17 }
 0x126   : > { %742 = vst.msk [vmem:[%s230_s17 + $0x10] sm:$0xff] %vm236_vm0, %v739_v18 }
 0x127   : > { %740 = vst.msk [vmem:[%s230_s17] sm:$0xff] %vm236_vm0, %v737_v20 }
 0x12a   : > { %v720_v21 = vld [vmem:[#allocation2] sm:$0xff] }
 0x12b   : > { %v728_v23 = vadd.f32 %v725_v22, %v720_v21 }
 0x12d   : > { %731 = vst.msk [vmem:[#allocation2] sm:$0xff] %vm236_vm0, %v728_v23 }
 0x12e PF: > { %s13_s14 = sadd.s32 1, %s1192_s14   ;;  %s1637_s12 = smov %s1188_s13 }
 0x12f   : > { %p10_p5 = scmp.ge.s32.totalorder %s13_s14, 4   ;;  %s1638_s13 = smov %s1640_s15 }
 0x131   :  { %12 = sbr.rel (!%p10_p5) target bundleno = 2 (0x2), region = 72 }

</bundles_post_ra>
